<compile_context>
chip_gen: v7x
topology: tpu7x:2x2x1
jax: 0.10.0
libtpu: 0.0.40
codegen_flags: <defaults>
</compile_context>

<pallas_src>
import functools

import jax
import jax.numpy as jnp
from jax.experimental import pallas as pl
from jax.experimental.pallas import tpu as pltpu

_LANE = 128     # lane width / minor-dim alignment
_TM = 256       # activation-row tile
_MAX_TN = 512   # weight-tile caps chosen so typical convs get nj == nk == 1
_MAX_TK = 2048


def _round_up(x, m):
    return (x + m - 1) // m * m


def _make_matmul_kernel(nk):
    """[TM, TK] @ [TK, TN] tile matmul; reduction over the innermost k axis.

    Bias is pre-folded into the operands, so there is no epilogue.  For
    nk == 1 the kernel is a single MXU dot written straight to o_ref;
    otherwise o_ref (k-invariant block, VMEM-resident) is the f32 accumulator.
    """
    if nk == 1:
        def kernel(p_ref, w_ref, o_ref):
            o_ref[...] = jnp.dot(p_ref[...], w_ref[...],
                                 preferred_element_type=jnp.float32)
    else:
        def kernel(p_ref, w_ref, o_ref):
            @pl.when(pl.program_id(2) == 0)
            def _():
                o_ref[...] = jnp.zeros_like(o_ref)

            o_ref[...] += jnp.dot(p_ref[...], w_ref[...],
                                  preferred_element_type=jnp.float32)
    return kernel


def _im2col_nhwc(x, K, stride, padding):
    """x: [B, Cin, H, W] f32 -> bf16 patches [B*OH*OW, K*K*Cin].

    NHWC extraction: channels (and taps) live on the lane axis; flatten order
    of the contraction dim is tap-major, channel-minor ((u*K+v)*Cin + c).
    """
    B, Cin, H, W = x.shape
    x_nhwc = jnp.transpose(x, (0, 2, 3, 1)).astype(jnp.bfloat16)
    if padding:
        x_nhwc = jnp.pad(
            x_nhwc, ((0, 0), (padding, padding), (padding, padding), (0, 0)))
    Hp, Wp = H + 2 * padding, W + 2 * padding
    OH = (Hp - K) // stride + 1
    OW = (Wp - K) // stride + 1
    taps = []
    for u in range(K):
        for v in range(K):
            taps.append(jax.lax.slice(
                x_nhwc,
                (0, u, v, 0),
                (B, u + (OH - 1) * stride + 1, v + (OW - 1) * stride + 1, Cin),
                (1, stride, stride, 1)))            # [B, OH, OW, Cin]
    patches = jnp.concatenate(taps, axis=-1)         # [B, OH, OW, K*K*Cin]
    return patches.reshape(B * OH * OW, K * K * Cin), OH, OW


@functools.partial(jax.jit, static_argnames=("stride", "padding"))
def conv2d_pallas(x, weight, bias, *, stride=1, padding=0):
    """Conv2D forward matching the PyTorch module.

    x:      [B, Cin, H, W]    float32
    weight: [Cout, Cin, K, K] float32 (OIHW)
    bias:   [Cout, 1]         float32
    returns [B, Cout, OH, OW] float32 (NCHW)
    """
    x = x.astype(jnp.float32)
    weight = weight.astype(jnp.float32)
    bias = bias.astype(jnp.float32)

    B, Cin, H, W = x.shape
    Cout, Cin_w, K, _ = weight.shape
    assert Cin == Cin_w

    # NHWC patch extraction, bf16 operands (cast before padding: halves HBM).
    patches, OH, OW = _im2col_nhwc(x, K, stride, padding)   # [M, Kd] bf16
    M, Kd = patches.shape

    # Weight in tap-major / channel-minor order to match the patch flattening,
    # Cout on the lane axis.  Bias folded in as an extra contraction row.
    w_mat = jnp.transpose(weight, (2, 3, 1, 0)).reshape(Kd, Cout)
    w_mat = w_mat.astype(jnp.bfloat16)
    b_row = bias.reshape(1, Cout).astype(jnp.bfloat16)

    Kd_aug = Kd + 1
    patches_aug = jnp.concatenate(
        [patches, jnp.ones((M, 1), jnp.bfloat16)], axis=1)   # [M, Kd+1]
    w_aug = jnp.concatenate([w_mat, b_row], axis=0)          # [Kd+1, Cout]

    # Tile sizes: for typical convs (Cout <= 512, Cin*K*K+1 <= 2048) there is
    # a single N tile and a single K tile -> weights are VMEM-resident across
    # the whole M loop (block index never changes, so the DMA happens once).
    Np = _round_up(Cout, _LANE)
    if Np <= _MAX_TN:
        TN = Np
    else:
        TN = 256
        Np = _round_up(Np, TN)
    Kp = _round_up(Kd_aug, _LANE)
    if Kp <= _MAX_TK:
        TK = Kp
    else:
        TK = 512
        Kp = _round_up(Kp, TK)
    Mp = _round_up(M, _TM)

    # Zero-padding the contraction dim contributes 0 to the dot products.
    patches_p = jnp.pad(patches_aug, ((0, Mp - M), (0, Kp - Kd_aug)))
    w_p = jnp.pad(w_aug, ((0, Kp - Kd_aug), (0, Np - Cout)))

    nm, nj, nk = Mp // _TM, Np // TN, Kp // TK

    cost = pl.CostEstimate(
        flops=2 * M * Kd_aug * Cout,
        transcendentals=0,
        bytes_accessed=Mp * Kp * 2 + Kp * Np * 2 + Mp * Np * 4,
    )

    out_mat = pl.pallas_call(
        _make_matmul_kernel(nk),
        out_shape=jax.ShapeDtypeStruct((Mp, Np), jnp.float32),
        grid=(nm, nj, nk),
        in_specs=[
            pl.BlockSpec((_TM, TK), lambda i, j, k: (i, k)),  # activations
            pl.BlockSpec((TK, TN), lambda i, j, k: (k, j)),   # weights+bias
        ],
        out_specs=pl.BlockSpec((_TM, TN), lambda i, j, k: (i, j)),
        compiler_params=pltpu.CompilerParams(
            dimension_semantics=("parallel", "parallel", "arbitrary"),
            vmem_limit_bytes=32 * 1024 * 1024,
        ),
        cost_estimate=cost,
    )(patches_p, w_p)

    # Un-pad and restore NCHW (mandated by the module's output layout).
    # TODO(synk): if the consumer accepts NHWC, drop this transpose and keep
    # Cout lane-dense end-to-end.
    out = out_mat[:M, :Cout].reshape(B, OH, OW, Cout).transpose(0, 3, 1, 2)
    return out


def _reference(x, weight, bias, stride, padding, cast_bf16=False):
    """XLA conv reference; optionally with bf16-rounded operands to match the
    kernel's documented bf16-input / f32-accumulate precision."""
    if cast_bf16:
        x = x.astype(jnp.bfloat16)
        weight = weight.astype(jnp.bfloat16)
        bias = bias.astype(jnp.bfloat16)
    Cout = weight.shape[0]
    ref = jax.lax.conv_general_dilated(
        x, weight,
        window_strides=(stride, stride),
        padding=[(padding, padding), (padding, padding)],
        dimension_numbers=("NCHW", "OIHW", "NCHW"),
        preferred_element_type=jnp.float32,
        precision=jax.lax.Precision.HIGHEST,
    )
    return ref + bias.reshape(1, Cout, 1, 1).astype(jnp.float32)


def _rel_err(a, b):
    return jnp.max(jnp.abs(a - b)) / jnp.maximum(jnp.max(jnp.abs(b)), 1e-6)


if __name__ == "__main__":
    key = jax.random.PRNGKey(0)
    k_w1, k_b1, k_x2, k_w2, k_b2 = jax.random.split(key, 5)

    # ---- Test 1: the exact module configuration ---------------------------
    # The global `inputs` tensor from the PyTorch script: [B=1, C_in=2, 3, 3].
    inputs = jnp.array(
        [[[[0.0, 1.0, 2.0], [3.0, 4.0, 5.0], [6.0, 7.0, 8.0]],
          [[1.0, 2.0, 3.0], [4.0, 5.0, 6.0], [7.0, 8.0, 9.0]]]],
        dtype=jnp.float32,
    )
    in_ch, out_ch, ksz, stride, padding = 2, 3, 2, 1, 0
    weight1 = jax.random.normal(k_w1, (out_ch, in_ch, ksz, ksz), dtype=jnp.float32)
    # Nonzero bias so the folded-bias path is actually validated.
    bias1 = jax.random.normal(k_b1, (out_ch, 1), dtype=jnp.float32)

    out1 = conv2d_pallas(inputs, weight1, bias1, stride=stride, padding=padding)
    out1 = jax.block_until_ready(out1)
    assert out1.shape == (1, out_ch, 2, 2), out1.shape
    ref1_bf = _reference(inputs, weight1, bias1, stride, padding, cast_bf16=True)
    ref1_f32 = _reference(inputs, weight1, bias1, stride, padding)
    assert jnp.allclose(out1, ref1_bf, atol=1e-2, rtol=1e-2), (out1, ref1_bf)
    assert _rel_err(out1, ref1_f32) < 2e-2, _rel_err(out1, ref1_f32)

    # ---- Test 2: a slightly larger shape exercising stride + padding ------
    x2 = jax.random.normal(k_x2, (2, 4, 16, 16), dtype=jnp.float32)
    weight2 = jax.random.normal(k_w2, (8, 4, 3, 3), dtype=jnp.float32)
    bias2 = jax.random.normal(k_b2, (8, 1), dtype=jnp.float32)
    out2 = conv2d_pallas(x2, weight2, bias2, stride=2, padding=1)
    out2 = jax.block_until_ready(out2)
    assert out2.shape == (2, 8, 8, 8), out2.shape
    ref2_bf = _reference(x2, weight2, bias2, 2, 1, cast_bf16=True)
    ref2_f32 = _reference(x2, weight2, bias2, 2, 1)
    assert jnp.allclose(out2, ref2_bf, atol=1e-2, rtol=1e-2), (
        jnp.max(jnp.abs(out2 - ref2_bf)))
    assert _rel_err(out2, ref2_f32) < 2e-2, _rel_err(out2, ref2_f32)

    print("KERNEL_OK")
</pallas_src>

<mosaic_0001>
module attributes {stable_mosaic.version = 11 : i64} {
  func.func @kernel(%arg0: i32, %arg1: i32, %arg2: i32, %arg3: memref<256x128xbf16, #tpu.memory_space<vmem>>, %arg4: memref<128x128xbf16, #tpu.memory_space<vmem>>, %arg5: memref<256x128xf32, #tpu.memory_space<vmem>>) attributes {dimension_semantics = [#tpu.dimension_semantics<parallel>, #tpu.dimension_semantics<parallel>, #tpu.dimension_semantics<arbitrary>], iteration_bounds = array<i64: 1, 1, 1>, scalar_prefetch = 0 : i64, scratch_operands = 0 : i64, tpu.core_type = #tpu.core_type<tc>, window_params = [{transform_indices = @transform_0, window_bounds = array<i64: 256, 128>}, {transform_indices = @transform_1, window_bounds = array<i64: 128, 128>}, {transform_indices = @transform_2, window_bounds = array<i64: 256, 128>}]} {
    %c0 = arith.constant 0 : index
    %c0_0 = arith.constant 0 : index
    %0 = vector.load %arg3[%c0, %c0_0] : memref<256x128xbf16, #tpu.memory_space<vmem>>, vector<256x128xbf16>
    %c0_1 = arith.constant 0 : index
    %c0_2 = arith.constant 0 : index
    %1 = vector.load %arg4[%c0_1, %c0_2] : memref<128x128xbf16, #tpu.memory_space<vmem>>, vector<128x128xbf16>
    %cst = arith.constant dense<0.000000e+00> : vector<256x128xf32>
    %2 = tpu.matmul %0, %1, %cst {dimension_numbers = #tpu.dot_dimension_numbers<[1], [0], [0], [1], [0, 0, 1, 1], [], []>} : vector<256x128xbf16>, vector<128x128xbf16>, vector<256x128xf32> -> vector<256x128xf32>
    %c0_3 = arith.constant 0 : index
    %c0_4 = arith.constant 0 : index
    %3 = vector.load %arg5[%c0_3, %c0_4] : memref<256x128xf32, #tpu.memory_space<vmem>>, vector<256x128xf32>
    tpu.vector_store %arg5[%c0_3, %c0_4], %2 {strides = array<i32>} : memref<256x128xf32, #tpu.memory_space<vmem>>, vector<256x128xf32>,
    return
  }
  func.func @transform_0(%arg0: i32, %arg1: i32, %arg2: i32) -> (i32, i32) {
    %c0_i32 = arith.constant 0 : i32
    return %arg0, %arg2 : i32, i32
  }
  func.func @transform_1(%arg0: i32, %arg1: i32, %arg2: i32) -> (i32, i32) {
    %c0_i32 = arith.constant 0 : i32
    return %arg2, %arg1 : i32, i32
  }
  func.func @transform_2(%arg0: i32, %arg1: i32, %arg2: i32) -> (i32, i32) {
    %c0_i32 = arith.constant 0 : i32
    return %arg0, %arg1 : i32, i32
  }
}

</mosaic_0001>

<bundles_post_ra>
// kernel: conv2d_pallas.1
= control target key start
LH: loop header
LB: loop body
LE: loop exit
PB: predicated region body
PF: predicated region fallthrough
CT: control target
= control target key end

     0   :  { %s720_s1 = inlined_call_operand.vmem [shape: bf16[128,128], index: 1, kind: input, shape index: {}]   ;;  %s721_s0 = inlined_call_operand.vmem [shape: bf16[256,128], index: 0, kind: input, shape index: {}]   ;;  %s722_s2 = inlined_call_operand.vmem [shape: f32[256,128], index: 2, kind: output, shape index: {}]  }
   0x1   :  { %v513_v0 = vld [vmem:[%s720_s1] sm:$0xff]   ;;  %v514_v1 = vld [vmem:[%s720_s1 + $0x8] sm:$0xff]   ;;  %v515_v2 = vld [vmem:[%s720_s1 + $0x10] sm:$0xff]  }
   0x2   :  { %449 = vmatprep.subr.bf16.mxu0 %v513_v0  ;;  %497 = vmatprep.subr.bf16.mxu1 %v513_v0  ;;  %v516_v3 = vld [vmem:[%s720_s1 + $0x18] sm:$0xff]   ;;  %v521_v4 = vld [vmem:[%s721_s0] sm:$0xff]   ;;  %v518_v7 = vld [vmem:[%s720_s1 + $0x28] sm:$0xff]  }
   0x3   :  { %450 = vmatpush3.bf16.msra.mxu0 %v513_v0  ;;  %505 = vmatpush3.bf16.msra.mxu1 %v513_v0  ;;  %v522_v5 = vld [vmem:[%s721_s0 + $0x40] sm:$0xff]   ;;  %v519_v8 = vld [vmem:[%s720_s1 + $0x30] sm:$0xff]   ;;  %v520_v9 = vld [vmem:[%s720_s1 + $0x38] sm:$0xff]  }
   0x4   :  { %451 = vmatprep.subr.bf16.mxu0 %v514_v1  ;;  %498 = vmatprep.subr.bf16.mxu1 %v514_v1  ;;  %v517_v6 = vld [vmem:[%s720_s1 + $0x20] sm:$0xff]   ;;  %v523_v10 = vld [vmem:[%s721_s0 + $0x8] sm:$0xff]   ;;  %v525_v12 = vld [vmem:[%s721_s0 + $0x10] sm:$0xff]  }
   0x5   :  { %465 = vmatprep.mubr.bf16.mxu0 %v521_v4  ;;  %481 = vmatprep.mubr.bf16.mxu1 %v522_v5  ;;  %v524_v11 = vld [vmem:[%s721_s0 + $0x48] sm:$0xff]   ;;  %v526_v13 = vld [vmem:[%s721_s0 + $0x50] sm:$0xff]   ;;  %v527_v14 = vld [vmem:[%s721_s0 + $0x18] sm:$0xff]  }
   0x6   :  { %v528_v15 = vld [vmem:[%s721_s0 + $0x58] sm:$0xff]   ;;  %v529_v16 = vld [vmem:[%s721_s0 + $0x20] sm:$0xff]   ;;  %v531_v18 = vld [vmem:[%s721_s0 + $0x28] sm:$0xff]  }
   0x7   :  { %452 = vmatpush3.bf16.msra.mxu0 %v514_v1  ;;  %506 = vmatpush3.bf16.msra.mxu1 %v514_v1  ;;  %v530_v17 = vld [vmem:[%s721_s0 + $0x60] sm:$0xff]   ;;  %v532_v19 = vld [vmem:[%s721_s0 + $0x68] sm:$0xff]   ;;  %v533_v20 = vld [vmem:[%s721_s0 + $0x30] sm:$0xff]  }
   0x8   :  { %453 = vmatprep.subr.bf16.mxu0 %v515_v2  ;;  %499 = vmatprep.subr.bf16.mxu1 %v515_v2  ;;  %v534_v21 = vld [vmem:[%s721_s0 + $0x70] sm:$0xff]   ;;  %v535_v22 = vld [vmem:[%s721_s0 + $0x38] sm:$0xff]  }
   0x9   :  { %v536_v23 = vld [vmem:[%s721_s0 + $0x78] sm:$0xff]  }
   0xb   :  { %454 = vmatpush3.bf16.msra.mxu0 %v515_v2  ;;  %507 = vmatpush3.bf16.msra.mxu1 %v515_v2 }
   0xc   :  { %455 = vmatprep.subr.bf16.mxu0 %v516_v3  ;;  %500 = vmatprep.subr.bf16.mxu1 %v516_v3 }
   0xf   :  { %456 = vmatpush3.bf16.msra.mxu0 %v516_v3  ;;  %508 = vmatpush3.bf16.msra.mxu1 %v516_v3 }
  0x10   :  { %457 = vmatprep.subr.bf16.mxu0 %v517_v6  ;;  %501 = vmatprep.subr.bf16.mxu1 %v517_v6 }
  0x13   :  { %458 = vmatpush3.bf16.msra.mxu0 %v517_v6  ;;  %509 = vmatpush3.bf16.msra.mxu1 %v517_v6 }
  0x14   :  { %459 = vmatprep.subr.bf16.mxu0 %v518_v7  ;;  %502 = vmatprep.subr.bf16.mxu1 %v518_v7 }
  0x17   :  { %460 = vmatpush3.bf16.msra.mxu0 %v518_v7  ;;  %510 = vmatpush3.bf16.msra.mxu1 %v518_v7 }
  0x18   :  { %461 = vmatprep.subr.bf16.mxu0 %v519_v8  ;;  %503 = vmatprep.subr.bf16.mxu1 %v519_v8 }
  0x1b   :  { %462 = vmatpush3.bf16.msra.mxu0 %v519_v8  ;;  %511 = vmatpush3.bf16.msra.mxu1 %v519_v8 }
  0x1c   :  { %463 = vmatprep.subr.bf16.mxu0 %v520_v9  ;;  %504 = vmatprep.subr.bf16.mxu1 %v520_v9 }
  0x1f   :  { %464 = vmatpush3.bf16.msra.mxu0 %v520_v9  ;;  %512 = vmatpush3.bf16.msra.mxu1 %v520_v9 }
  0x22   :  { %466 = vmatmul.mubr.bf16.vlgmr.msra.gmra.mrb[0].mxu0 %v523_v10  ;;  %482 = vmatmul.mubr.bf16.vlgmr.msra.gmra.mrb[0].mxu1 %v524_v11 }
  0x23   :  { %469 = vmatprep.mubr.bf16.mxu0 %v525_v12  ;;  %485 = vmatprep.mubr.bf16.mxu1 %v526_v13 }
  0x2a   :  { %470 = vmatmul.mubr.bf16.gmra.mrb[4].mxu0 %v527_v14  ;;  %486 = vmatmul.mubr.bf16.gmra.mrb[4].mxu1 %v528_v15 }
  0x2b   :  { %473 = vmatprep.mubr.bf16.mxu0 %v529_v16  ;;  %489 = vmatprep.mubr.bf16.mxu1 %v530_v17 }
  0x32   :  { %474 = vmatmul.mubr.bf16.gmra.mrb[8].mxu0 %v531_v18  ;;  %490 = vmatmul.mubr.bf16.gmra.mrb[8].mxu1 %v532_v19 }
  0x33   :  { %477 = vmatprep.mubr.bf16.mxu0 %v533_v20  ;;  %493 = vmatprep.mubr.bf16.mxu1 %v534_v21 }
  0x3a   :  { %478 = vmatmul.mubr.bf16.gmra.mrb[12].mxu0 %v535_v22  ;;  %494 = vmatmul.mubr.bf16.gmra.mrb[12].mxu1 %v536_v23 }
  0xf5   :  { %v467_v24 = vpop.f32.mrb[0].mxu0  ;;  %v483_v25 = vpop.f32.mrb[0].mxu1 }
  0xf6   :  { %367 = vst [vmem:[%s722_s2 + $0x10] sm:$0xff] %v467_v24  ;;  %383 = vst [vmem:[%s722_s2 + $0x90] sm:$0xff] %v483_v25  ;;  %v238_v26 = vpop.f32.mrb[1].mxu0  ;;  %v302_v27 = vpop.f32.mrb[1].mxu1 }
  0xf7   :  { %365 = vst [vmem:[%s722_s2] sm:$0xff] %v238_v26  ;;  %381 = vst [vmem:[%s722_s2 + $0x80] sm:$0xff] %v302_v27  ;;  %v468_v28 = vpop.f32.mrb[2].mxu0  ;;  %v484_v29 = vpop.f32.mrb[2].mxu1 }
  0xf8   :  { %368 = vst [vmem:[%s722_s2 + $0x18] sm:$0xff] %v468_v28  ;;  %384 = vst [vmem:[%s722_s2 + $0x98] sm:$0xff] %v484_v29  ;;  %v241_v30 = vpop.f32.mrb[3].mxu0  ;;  %v305_v31 = vpop.f32.mrb[3].mxu1 }
  0xf9   :  { %366 = vst [vmem:[%s722_s2 + $0x8] sm:$0xff] %v241_v30  ;;  %382 = vst [vmem:[%s722_s2 + $0x88] sm:$0xff] %v305_v31 }
  0xfd   :  { %v471_v32 = vpop.f32.mrb[4].mxu0  ;;  %v487_v33 = vpop.f32.mrb[4].mxu1 }
  0xfe   :  { %371 = vst [vmem:[%s722_s2 + $0x30] sm:$0xff] %v471_v32  ;;  %387 = vst [vmem:[%s722_s2 + $0xb0] sm:$0xff] %v487_v33  ;;  %v254_v34 = vpop.f32.mrb[5].mxu0  ;;  %v318_v35 = vpop.f32.mrb[5].mxu1 }
  0xff   :  { %369 = vst [vmem:[%s722_s2 + $0x20] sm:$0xff] %v254_v34  ;;  %385 = vst [vmem:[%s722_s2 + $0xa0] sm:$0xff] %v318_v35  ;;  %v472_v36 = vpop.f32.mrb[6].mxu0  ;;  %v488_v37 = vpop.f32.mrb[6].mxu1 }
 0x100   :  { %372 = vst [vmem:[%s722_s2 + $0x38] sm:$0xff] %v472_v36  ;;  %388 = vst [vmem:[%s722_s2 + $0xb8] sm:$0xff] %v488_v37  ;;  %v257_v38 = vpop.f32.mrb[7].mxu0  ;;  %v321_v39 = vpop.f32.mrb[7].mxu1 }
 0x101   :  { %370 = vst [vmem:[%s722_s2 + $0x28] sm:$0xff] %v257_v38  ;;  %386 = vst [vmem:[%s722_s2 + $0xa8] sm:$0xff] %v321_v39 }
 0x105   :  { %v475_v40 = vpop.f32.mrb[8].mxu0  ;;  %v491_v41 = vpop.f32.mrb[8].mxu1 }
 0x106   :  { %375 = vst [vmem:[%s722_s2 + $0x50] sm:$0xff] %v475_v40  ;;  %391 = vst [vmem:[%s722_s2 + $0xd0] sm:$0xff] %v491_v41  ;;  %v270_v42 = vpop.f32.mrb[9].mxu0  ;;  %v334_v43 = vpop.f32.mrb[9].mxu1 }
 0x107   :  { %373 = vst [vmem:[%s722_s2 + $0x40] sm:$0xff] %v270_v42  ;;  %389 = vst [vmem:[%s722_s2 + $0xc0] sm:$0xff] %v334_v43  ;;  %v476_v44 = vpop.f32.mrb[10].mxu0  ;;  %v492_v45 = vpop.f32.mrb[10].mxu1 }
 0x108   :  { %376 = vst [vmem:[%s722_s2 + $0x58] sm:$0xff] %v476_v44  ;;  %392 = vst [vmem:[%s722_s2 + $0xd8] sm:$0xff] %v492_v45  ;;  %v273_v46 = vpop.f32.mrb[11].mxu0  ;;  %v337_v47 = vpop.f32.mrb[11].mxu1 }
 0x109   :  { %374 = vst [vmem:[%s722_s2 + $0x48] sm:$0xff] %v273_v46  ;;  %390 = vst [vmem:[%s722_s2 + $0xc8] sm:$0xff] %v337_v47 }
 0x10d   :  { %v479_v48 = vpop.f32.mrb[12].mxu0  ;;  %v495_v49 = vpop.f32.mrb[12].mxu1 }
 0x10e   :  { %379 = vst [vmem:[%s722_s2 + $0x70] sm:$0xff] %v479_v48  ;;  %395 = vst [vmem:[%s722_s2 + $0xf0] sm:$0xff] %v495_v49  ;;  %v286_v50 = vpop.f32.mrb[13].mxu0  ;;  %v350_v51 = vpop.f32.mrb[13].mxu1 }
 0x10f   :  { %377 = vst [vmem:[%s722_s2 + $0x60] sm:$0xff] %v286_v50  ;;  %393 = vst [vmem:[%s722_s2 + $0xe0] sm:$0xff] %v350_v51  ;;  %v480_v52 = vpop.f32.mrb[14].mxu0  ;;  %v496_v53 = vpop.f32.mrb[14].mxu1 }
 0x110   :  { %380 = vst [vmem:[%s722_s2 + $0x78] sm:$0xff] %v480_v52  ;;  %396 = vst [vmem:[%s722_s2 + $0xf8] sm:$0xff] %v496_v53  ;;  %v289_v54 = vpop.f32.mrb[15].mxu0  ;;  %v353_v55 = vpop.f32.mrb[15].mxu1 }
 0x111   :  { %378 = vst [vmem:[%s722_s2 + $0x68] sm:$0xff] %v289_v54  ;;  %394 = vst [vmem:[%s722_s2 + $0xe8] sm:$0xff] %v353_v55 }

</bundles_post_ra>
